<compile_context>
chip_gen: v7x
topology: tpu7x:2x2x1
jax: 0.10.0
libtpu: 0.0.40
codegen_flags: <defaults>
</compile_context>

<pallas_src>
import jax
import jax.numpy as jnp
from jax.experimental import pallas as pl
from jax.experimental.pallas import tpu as pltpu


def _round_up(x, m):
    return ((x + m - 1) // m) * m


def _vmem_capacity_bytes():
    try:
        info = pltpu.get_tpu_info()
        cap = getattr(info, "vmem_capacity_bytes", None)
        if cap:
            return int(cap)
    except Exception:
        pass
    return 64 * 1024 * 1024  # conservative fallback (v7x per-TensorCore VMEM)


# ----------------------------------------------------------------------------
# Kernels.  Grid = (row_tiles, f_chunks); axis 1 is the hidden-dim reduction
# for fc2, so the output block is resident across it (accumulator pattern).
# ----------------------------------------------------------------------------
def _ffn_kernel_accout(x_ref, w1_ref, b1_ref, w2_ref, b2_ref, o_ref):
    """float32 output: accumulate directly into the resident output block."""
    k = pl.program_id(1)
    h = jnp.dot(x_ref[...], w1_ref[...], preferred_element_type=jnp.float32)
    h = jnp.maximum(h + b1_ref[...], 0.0)                       # (tm, tf)
    contrib = jnp.dot(h.astype(w2_ref.dtype), w2_ref[...],
                      preferred_element_type=jnp.float32)       # (tm, E_pad)

    @pl.when(k == 0)
    def _():
        o_ref[...] = contrib + b2_ref[...]   # init with b2 -> no finalize pass

    @pl.when(k > 0)
    def _():
        o_ref[...] += contrib


def _ffn_kernel_scratch(x_ref, w1_ref, b1_ref, w2_ref, b2_ref, o_ref, acc_ref):
    """Non-float32 output: f32 VMEM accumulator, finalize is a pure cast."""
    k = pl.program_id(1)
    h = jnp.dot(x_ref[...], w1_ref[...], preferred_element_type=jnp.float32)
    h = jnp.maximum(h + b1_ref[...], 0.0)
    contrib = jnp.dot(h.astype(w2_ref.dtype), w2_ref[...],
                      preferred_element_type=jnp.float32)

    @pl.when(k == 0)
    def _():
        acc_ref[...] = contrib + b2_ref[...]

    @pl.when(k > 0)
    def _():
        acc_ref[...] += contrib

    @pl.when(k == pl.num_programs(1) - 1)
    def _():
        o_ref[...] = acc_ref[...].astype(o_ref.dtype)


# ----------------------------------------------------------------------------
# Tile selection against an explicit VMEM budget.
# ----------------------------------------------------------------------------
def _select_tiles(m8, E_pad, F_lane, in_bytes, out_bytes, need_scratch,
                  budget, tm_req, tf_req):
    def working_set(tm, tf, wbufs):
        b = 2 * tm * E_pad * in_bytes            # x tile (double-buffered)
        b += 2 * tm * E_pad * out_bytes          # output tile
        b += wbufs * E_pad * tf * in_bytes       # W1 chunk
        b += wbufs * tf * E_pad * in_bytes       # W2 chunk
        b += 2 * 8 * tf * 4 + 2 * 8 * E_pad * 4  # biases (sublane-padded)
        if need_scratch:
            b += tm * E_pad * 4                  # f32 accumulator
        return b

    # ---- row tiling ---------------------------------------------------------
    tm_target = _round_up(tm_req, 8) if tm_req is not None else 512
    if m8 <= tm_target:
        num_rows = 2 if m8 >= 512 else 1   # >= 2 blocks keeps both v7x TCs busy
    else:
        num_rows = pl.cdiv(m8, tm_target)
    tm_eff = _round_up(pl.cdiv(m8, num_rows), 8)

    # ---- hidden-dim tiling: prefer fully VMEM-resident weights --------------
    if tf_req is not None:
        tf_candidates = [min(_round_up(tf_req, 128), F_lane)]
    else:
        tf_candidates = [F_lane, 512, 384, 256, 128]
    tf_candidates = list(dict.fromkeys(min(t, F_lane) for t in tf_candidates))

    tf_eff = None
    for cand in tf_candidates:
        if working_set(tm_eff, cand, 2) <= budget:
            tf_eff = cand
            break
    if tf_eff is None:
        tf_eff = tf_candidates[-1]
        while tm_eff > 8 and working_set(tm_eff, tf_eff, 2) > budget:
            tm_eff = max(8, _round_up(tm_eff // 2, 8))
        num_rows = pl.cdiv(m8, tm_eff)

    num_f = pl.cdiv(F_lane, tf_eff)
    # Deeper buffering on the weight streams only (hides weight-DMA latency
    # when the hidden dim is streamed).
    wbufs = 3 if (num_f >= 3 and working_set(tm_eff, tf_eff, 3) <= budget) else 2
    return tm_eff, num_rows, tf_eff, num_f, wbufs


# ----------------------------------------------------------------------------
# Wrapper.
# ----------------------------------------------------------------------------
def feed_forward(x, w1, b1, w2, b2, *, tm=None, tf=None, compute_dtype=None):
    """relu(x @ w1 + b1) @ w2 + b2.

    x: (batch, seq, E).  w1: (E, F), b1: (F,), w2: (F, E), b2: (E,).
    compute_dtype: optional low-precision matmul inputs (e.g. jnp.bfloat16);
      accumulation stays float32.  For repeated calls, pre-cast / pre-pad the
      weights outside this function to avoid per-call HBM copies.
    """
    batch, seq, embed = x.shape
    ff_dim = w1.shape[1]
    out_dtype = x.dtype
    M = batch * seq

    if compute_dtype is not None:
        x = x.astype(compute_dtype)
        w1 = w1.astype(compute_dtype)
        w2 = w2.astype(compute_dtype)
    b1 = b1.astype(jnp.float32)
    b2 = b2.astype(jnp.float32)

    in_bytes = jnp.dtype(x.dtype).itemsize
    out_bytes = jnp.dtype(out_dtype).itemsize
    need_scratch = jnp.dtype(out_dtype) != jnp.float32

    m8 = _round_up(M, 8)
    E_pad = _round_up(embed, 128)
    F_lane = _round_up(ff_dim, 128)

    vmem_cap = _vmem_capacity_bytes()
    budget = int(0.60 * vmem_cap)   # headroom for compiler scratch, sems, ...
    tm_eff, num_rows, tf_eff, num_f, wbufs = _select_tiles(
        m8, E_pad, F_lane, in_bytes, out_bytes, need_scratch, budget, tm, tf)

    M_pad = num_rows * tm_eff
    F_pad = num_f * tf_eff

    # Pad only when needed.  Zero padding is exact: padded E columns contribute
    # 0 to the contraction; padded F columns give relu(0 + 0) = 0 for fc2.
    x2d = x.reshape(M, embed)
    if M_pad != M or E_pad != embed:
        x2d = jnp.pad(x2d, ((0, M_pad - M), (0, E_pad - embed)))
    w1p = w1 if (E_pad == embed and F_pad == ff_dim) else jnp.pad(
        w1, ((0, E_pad - embed), (0, F_pad - ff_dim)))
    w2p = w2 if (F_pad == ff_dim and E_pad == embed) else jnp.pad(
        w2, ((0, F_pad - ff_dim), (0, E_pad - embed)))
    b1p = b1.reshape(1, ff_dim)
    if F_pad != ff_dim:
        b1p = jnp.pad(b1p, ((0, 0), (0, F_pad - ff_dim)))
    b2p = b2.reshape(1, embed)
    if E_pad != embed:
        b2p = jnp.pad(b2p, ((0, 0), (0, E_pad - embed)))

    # Weight streams: constant block index when num_f == 1 (DMA'd once, fully
    # VMEM-resident); otherwise streamed chunks, optionally 3-deep buffered.
    if wbufs > 2:
        w1_spec = pl.BlockSpec((E_pad, tf_eff), lambda i, k: (0, k),
                               pipeline_mode=pl.Buffered(wbufs))
        w2_spec = pl.BlockSpec((tf_eff, E_pad), lambda i, k: (k, 0),
                               pipeline_mode=pl.Buffered(wbufs))
    else:
        w1_spec = pl.BlockSpec((E_pad, tf_eff), lambda i, k: (0, k))
        w2_spec = pl.BlockSpec((tf_eff, E_pad), lambda i, k: (k, 0))

    kernel = _ffn_kernel_scratch if need_scratch else _ffn_kernel_accout
    scratch_shapes = (
        [pltpu.VMEM((tm_eff, E_pad), jnp.float32)] if need_scratch else []
    )

    # Advisory cost estimate (padded flops + padded bytes, consistently).
    flops = 4 * M_pad * E_pad * F_pad
    bytes_accessed = (
        sum(int(a.size) * a.dtype.itemsize for a in (x2d, w1p, b1p, w2p, b2p))
        + M_pad * E_pad * out_bytes
    )
    cost = pl.CostEstimate(flops=flops, transcendentals=0,
                           bytes_accessed=bytes_accessed)

    out2d = pl.pallas_call(
        kernel,
        out_shape=jax.ShapeDtypeStruct((M_pad, E_pad), out_dtype),
        grid_spec=pltpu.PrefetchScalarGridSpec(
            num_scalar_prefetch=0,
            grid=(num_rows, num_f),
            in_specs=[
                pl.BlockSpec((tm_eff, E_pad), lambda i, k: (i, 0)),  # x rows
                w1_spec,                                             # W1 chunk
                pl.BlockSpec((1, tf_eff), lambda i, k: (0, k)),      # b1 chunk
                w2_spec,                                             # W2 chunk
                pl.BlockSpec((1, E_pad), lambda i, k: (0, 0)),       # b2
            ],
            out_specs=pl.BlockSpec((tm_eff, E_pad), lambda i, k: (i, 0)),
            scratch_shapes=scratch_shapes,
        ),
        compiler_params=pltpu.CompilerParams(
            dimension_semantics=("parallel", "arbitrary"),
            vmem_limit_bytes=int(0.85 * vmem_cap),
        ),
        cost_estimate=cost,
    )(x2d, w1p, b1p, w2p, b2p)

    return out2d[:M, :embed].reshape(batch, seq, embed)


if __name__ == "__main__":
    # Small shapes consistent with the module: (batch, seq, embed_size).
    batch, seq, embed_size, ff_dim = 2, 8, 32, 64

    key = jax.random.PRNGKey(0)
    kx, kw1, kb1, kw2, kb2 = jax.random.split(key, 5)

    x = jax.random.normal(kx, (batch, seq, embed_size), dtype=jnp.float32)
    w1 = jax.random.normal(kw1, (embed_size, ff_dim), dtype=jnp.float32) * 0.05
    b1 = jax.random.normal(kb1, (ff_dim,), dtype=jnp.float32) * 0.05
    w2 = jax.random.normal(kw2, (ff_dim, embed_size), dtype=jnp.float32) * 0.05
    b2 = jax.random.normal(kb2, (embed_size,), dtype=jnp.float32) * 0.05

    ref = jnp.maximum(x @ w1 + b1, 0.0) @ w2 + b2

    # 1) fp32, weight-resident path (num_f == 1), accumulate-into-output kernel.
    out = feed_forward(x, w1, b1, w2, b2)
    jax.block_until_ready(out)
    assert out.shape == (batch, seq, embed_size)
    assert jnp.allclose(out, ref, atol=1e-5, rtol=1e-5)

    # 2) bf16 compute (f32 accumulation, f32 output) — the recommended perf path.
    out_bf16 = feed_forward(x, w1, b1, w2, b2, compute_dtype=jnp.bfloat16)
    jax.block_until_ready(out_bf16)
    assert jnp.allclose(out_bf16, ref, atol=5e-2, rtol=5e-2)

    # 3) bf16 activations/output -> exercises the scratch-accumulator kernel.
    out_b = feed_forward(x.astype(jnp.bfloat16), w1, b1, w2, b2,
                         compute_dtype=jnp.bfloat16)
    jax.block_until_ready(out_b)
    assert out_b.dtype == jnp.bfloat16
    assert jnp.allclose(out_b.astype(jnp.float32), ref, atol=5e-2, rtol=5e-2)

    # 4) streamed hidden dim (num_f == 3 -> Buffered(3) weight streams).
    ff_dim2 = 384
    kw1s, kb1s, kw2s = jax.random.split(kw1, 3)
    w1s = jax.random.normal(kw1s, (embed_size, ff_dim2), dtype=jnp.float32) * 0.05
    b1s = jax.random.normal(kb1s, (ff_dim2,), dtype=jnp.float32) * 0.05
    w2s = jax.random.normal(kw2s, (ff_dim2, embed_size), dtype=jnp.float32) * 0.05
    refs = jnp.maximum(x @ w1s + b1s, 0.0) @ w2s + b2
    outs = feed_forward(x, w1s, b1s, w2s, b2, tf=128)
    jax.block_until_ready(outs)
    assert jnp.allclose(outs, refs, atol=1e-5, rtol=1e-5)

    print("KERNEL_OK")
</pallas_src>

<mosaic_0001>
module attributes {stable_mosaic.version = 11 : i64} {
  func.func @_ffn_kernel_accout(%arg0: i32, %arg1: i32, %arg2: memref<16x128xf32, #tpu.memory_space<vmem>>, %arg3: memref<128x128xf32, #tpu.memory_space<vmem>>, %arg4: memref<1x128xf32, #tpu.memory_space<vmem>>, %arg5: memref<128x128xf32, #tpu.memory_space<vmem>>, %arg6: memref<1x128xf32, #tpu.memory_space<vmem>>, %arg7: memref<16x128xf32, #tpu.memory_space<vmem>>) attributes {dimension_semantics = [#tpu.dimension_semantics<parallel>, #tpu.dimension_semantics<arbitrary>], iteration_bounds = array<i64: 1, 1>, scalar_prefetch = 0 : i64, scratch_operands = 0 : i64, tpu.core_type = #tpu.core_type<tc>, window_params = [{transform_indices = @transform_0, window_bounds = array<i64: 16, 128>}, {transform_indices = @transform_1, window_bounds = array<i64: 128, 128>}, {transform_indices = @transform_2, window_bounds = array<i64: 1, 128>}, {transform_indices = @transform_3, window_bounds = array<i64: 128, 128>}, {pipeline_mode = #tpu.pipeline_mode<synchronous>, transform_indices = @transform_4, window_bounds = array<i64: 1, 128>}, {transform_indices = @transform_5, window_bounds = array<i64: 16, 128>}]} {
    %c0 = arith.constant 0 : index
    %c0_0 = arith.constant 0 : index
    %0 = vector.load %arg2[%c0, %c0_0] : memref<16x128xf32, #tpu.memory_space<vmem>>, vector<16x128xf32>
    %c0_1 = arith.constant 0 : index
    %c0_2 = arith.constant 0 : index
    %1 = vector.load %arg3[%c0_1, %c0_2] : memref<128x128xf32, #tpu.memory_space<vmem>>, vector<128x128xf32>
    %cst = arith.constant dense<0.000000e+00> : vector<16x128xf32>
    %2 = tpu.matmul %0, %1, %cst {dimension_numbers = #tpu.dot_dimension_numbers<[1], [0], [0], [1], [0, 0, 1, 1], [], []>} : vector<16x128xf32>, vector<128x128xf32>, vector<16x128xf32> -> vector<16x128xf32>
    %c0_3 = arith.constant 0 : index
    %c0_4 = arith.constant 0 : index
    %3 = vector.load %arg4[%c0_3, %c0_4] : memref<1x128xf32, #tpu.memory_space<vmem>>, vector<1x128xf32>
    %4 = vector.broadcast %3 : vector<1x128xf32> to vector<16x128xf32>
    %5 = arith.addf %2, %4 : vector<16x128xf32>
    %cst_5 = arith.constant 0.000000e+00 : f32
    %6 = vector.broadcast %cst_5 : f32 to vector<16x128xf32>
    %7 = arith.maximumf %5, %6 : vector<16x128xf32>
    %c0_6 = arith.constant 0 : index
    %c0_7 = arith.constant 0 : index
    %8 = vector.load %arg5[%c0_6, %c0_7] : memref<128x128xf32, #tpu.memory_space<vmem>>, vector<128x128xf32>
    %cst_8 = arith.constant dense<0.000000e+00> : vector<16x128xf32>
    %9 = tpu.matmul %7, %8, %cst_8 {dimension_numbers = #tpu.dot_dimension_numbers<[1], [0], [0], [1], [0, 0, 1, 1], [], []>} : vector<16x128xf32>, vector<128x128xf32>, vector<16x128xf32> -> vector<16x128xf32>
    %c0_i32 = arith.constant 0 : i32
    %10 = arith.cmpi eq, %arg1, %c0_i32 : i32
    %11 = arith.extui %10 : i1 to i32
    %c0_i32_9 = arith.constant 0 : i32
    %12 = arith.cmpi ne, %11, %c0_i32_9 : i32
    scf.if %12 {
      %c0_12 = arith.constant 0 : index
      %c0_13 = arith.constant 0 : index
      %16 = vector.load %arg6[%c0_12, %c0_13] : memref<1x128xf32, #tpu.memory_space<vmem>>, vector<1x128xf32>
      %17 = vector.broadcast %16 : vector<1x128xf32> to vector<16x128xf32>
      %18 = arith.addf %9, %17 : vector<16x128xf32>
      %c0_14 = arith.constant 0 : index
      %c0_15 = arith.constant 0 : index
      %19 = vector.load %arg7[%c0_14, %c0_15] : memref<16x128xf32, #tpu.memory_space<vmem>>, vector<16x128xf32>
      tpu.vector_store %arg7[%c0_14, %c0_15], %18 {strides = array<i32>} : memref<16x128xf32, #tpu.memory_space<vmem>>, vector<16x128xf32>,
    } else {
    }
    %c0_i32_10 = arith.constant 0 : i32
    %13 = arith.cmpi sgt, %arg1, %c0_i32_10 : i32
    %14 = arith.extui %13 : i1 to i32
    %c0_i32_11 = arith.constant 0 : i32
    %15 = arith.cmpi ne, %14, %c0_i32_11 : i32
    scf.if %15 {
      %c0_12 = arith.constant 0 : index
      %c0_13 = arith.constant 0 : index
      %16 = vector.load %arg7[%c0_12, %c0_13] : memref<16x128xf32, #tpu.memory_space<vmem>>, vector<16x128xf32>
      %17 = arith.addf %16, %9 : vector<16x128xf32>
      %c0_14 = arith.constant 0 : index
      %c0_15 = arith.constant 0 : index
      %18 = vector.load %arg7[%c0_14, %c0_15] : memref<16x128xf32, #tpu.memory_space<vmem>>, vector<16x128xf32>
      tpu.vector_store %arg7[%c0_14, %c0_15], %17 {strides = array<i32>} : memref<16x128xf32, #tpu.memory_space<vmem>>, vector<16x128xf32>,
    } else {
    }
    return
  }
  func.func @transform_0(%arg0: i32, %arg1: i32) -> (i32, i32) {
    %c0_i32 = arith.constant 0 : i32
    %c0_i32_0 = arith.constant 0 : i32
    return %arg0, %c0_i32 : i32, i32
  }
  func.func @transform_1(%arg0: i32, %arg1: i32) -> (i32, i32) {
    %c0_i32 = arith.constant 0 : i32
    %c0_i32_0 = arith.constant 0 : i32
    return %c0_i32, %arg1 : i32, i32
  }
  func.func @transform_2(%arg0: i32, %arg1: i32) -> (i32, i32) {
    %c0_i32 = arith.constant 0 : i32
    %c0_i32_0 = arith.constant 0 : i32
    return %c0_i32, %arg1 : i32, i32
  }
  func.func @transform_3(%arg0: i32, %arg1: i32) -> (i32, i32) {
    %c0_i32 = arith.constant 0 : i32
    %c0_i32_0 = arith.constant 0 : i32
    return %arg1, %c0_i32 : i32, i32
  }
  func.func @transform_4(%arg0: i32, %arg1: i32) -> (i32, i32) {
    %c0_i32 = arith.constant 0 : i32
    %c0_i32_0 = arith.constant 0 : i32
    %c0_i32_1 = arith.constant 0 : i32
    return %c0_i32, %c0_i32_0 : i32, i32
  }
  func.func @transform_5(%arg0: i32, %arg1: i32) -> (i32, i32) {
    %c0_i32 = arith.constant 0 : i32
    %c0_i32_0 = arith.constant 0 : i32
    return %arg0, %c0_i32 : i32, i32
  }
}

</mosaic_0001>

<bundles_post_ra>
// kernel: tpu_custom_call.1
= control target key start
LH: loop header
LB: loop body
LE: loop exit
PB: predicated region body
PF: predicated region fallthrough
CT: control target
= control target key end

     0   :  { %10 = vsyncpa [#allocation3], 0  ;;  %s679_s0 = inlined_call_operand.hbm [shape: f32[16,128], index: 0, kind: input, shape index: {}]   ;;  %s680_s1 = inlined_call_operand.hbm [shape: f32[128,128], index: 1, kind: input, shape index: {}]   ;;  %s681_s2 = inlined_call_operand.vmem [shape: f32[1,128], index: 2, kind: input, shape index: {}]   ;;  %s682_s3 = inlined_call_operand.hbm [shape: f32[128,128], index: 3, kind: input, shape index: {}]   ;;  %s683_s4 = inlined_call_operand.vmem [shape: f32[1,128], index: 4, kind: input, shape index: {}]   ;;  %s684_s5 = inlined_call_operand.hbm [shape: f32[16,128], index: 5, kind: output, shape index: {}]  }
   0x1   :  { %11 = vsyncpa [#allocation6], 0 }
   0x2   :  { %12 = vsyncpa [#allocation4], 0  ;;  %s570_s18 = smov [#allocation5]   ;;  %s571_s20 = smov [#allocation2]  }
   0x3   :  { %s30_s19 = sshll.u32 %s570_s18, 4  ;;  %s18_s21 = sshll.u32 %s571_s20, 4  ;;  %s31_s19 = int_to_ptr.vmem [resolvable:$true] %s30_s19  ;;  %s606_s21 = int_to_ptr.vmem [resolvable:$true] %s18_s21 }
   0x4   :  { %s476_s24 = scalar_lea.hbm %s680_s1, 2048 }
   0x5   :  { %p477_p0 = scmp.ne.s32.totalorder %s680_s1, %s476_s24  ;;  %p480_p1 = scmp.lt.u32.totalorder %s476_s24, %s680_s1 }
   0x7   :  { %p482_p2 = pnand %p480_p1, %p477_p0 }
   0x9   :  { %485 = shalt.err (!%p482_p2)
}
   0xa   :  { %s486_s29 = scalar_lea.vmem %s31_s19, 2048  ;;  %p491_p4 = scmp.lt.s32.totalorder %s31_s19, %s31_s19 }
   0xb   :  { %p487_p3 = scmp.ne.s32.totalorder %s31_s19, %s486_s29  ;;  %p492_p5 = scmp.lt.s32.totalorder %s486_s29, %s486_s29 }
   0xd   :  { %p493_p6 = por %p492_p5, %p491_p4 }
   0xf   :  { %p494_p7 = pnand %p493_p6, %p487_p3 }
  0x11   :  { %497 = shalt.err (!%p494_p7)
}
  0x12   :  { %s572_s30 = smov 128   ;;  %s573_s6 = smov 8  }
  0x13   :  { %36 = dma.hbm_to_vmem [thread:$0]  %s680_s1, 2048, %s31_s19, [#allocation6], %s572_s30, %s572_s30, %s573_s6  }
  0x14   :  { %s498_s11 = scalar_lea.hbm %s679_s0, 256 }
  0x15   :  { %p499_p8 = scmp.ne.s32.totalorder %s679_s0, %s498_s11  ;;  %p502_p9 = scmp.lt.u32.totalorder %s498_s11, %s679_s0 }
  0x17   :  { %p504_p10 = pnand %p502_p9, %p499_p8 }
  0x19   :  { %507 = shalt.err (!%p504_p10)
}
  0x1a   :  { %s508_s16 = scalar_lea.vmem %s606_s21, 256  ;;  %p513_p12 = scmp.lt.s32.totalorder %s606_s21, %s606_s21 }
  0x1b   :  { %p509_p11 = scmp.ne.s32.totalorder %s606_s21, %s508_s16  ;;  %p514_p13 = scmp.lt.s32.totalorder %s508_s16, %s508_s16 }
  0x1d   :  { %p515_p0 = por %p514_p13, %p513_p12 }
  0x1f   :  { %p516_p1 = pnand %p515_p0, %p509_p11 }
  0x21   :  { %519 = shalt.err (!%p516_p1)
}
  0x22   :  { %24 = dma.hbm_to_vmem [thread:$0]  %s679_s0, 256, %s606_s21, [#allocation3], %s572_s30, %s572_s30, %s573_s6  }
  0x23   :  { %s574_s18 = smov [#allocation7]   ;;  %s520_s23 = scalar_lea.hbm %s682_s3, 2048 }
  0x24   :  { %s44_s19 = sshll.u32 %s574_s18, 4  ;;  %p521_p2 = scmp.ne.s32.totalorder %s682_s3, %s520_s23  ;;  %s45_s19 = int_to_ptr.vmem [resolvable:$true] %s44_s19 }
  0x25   :  { %p524_p3 = scmp.lt.u32.totalorder %s520_s23, %s682_s3 }
  0x27   :  { %p526_p4 = pnand %p524_p3, %p521_p2 }
  0x29   :  { %529 = shalt.err (!%p526_p4)
}
  0x2a   :  { %s530_s28 = scalar_lea.vmem %s45_s19, 2048  ;;  %p535_p6 = scmp.lt.s32.totalorder %s45_s19, %s45_s19 }
  0x2b   :  { %p531_p5 = scmp.ne.s32.totalorder %s45_s19, %s530_s28  ;;  %p536_p7 = scmp.lt.s32.totalorder %s530_s28, %s530_s28 }
  0x2d   :  { %p537_p8 = por %p536_p7, %p535_p6 }
  0x2f   :  { %p538_p9 = pnand %p537_p8, %p531_p5 }
  0x31   :  { %541 = shalt.err (!%p538_p9)
}
  0x32   :  { %50 = dma.hbm_to_vmem [thread:$0]  %s682_s3, 2048, %s45_s19, [#allocation6], %s572_s30, %s572_s30, %s573_s6  }
  0x33   :  { %564 = dma.done.wait [#allocation3], 256  }
  0x34   :  { %565 = vsyncadd [#allocation3], 4294967040 }
  0x35   :  { %566 = dma.done.wait [#allocation6], 4096  }
  0x36   :  { %567 = vsyncadd [#allocation6], 4294963200  ;;  %v64_v0 = vld [vmem:[#allocation5] sm:$0xff]  ;;  %v65_v1 = vld [vmem:[#allocation5 + $0x8] sm:$0xff]  ;;  %s575_s9 = smov [#allocation8]  }
  0x37   :  { %v66_v2 = vld [vmem:[#allocation5 + $0x10] sm:$0xff]  ;;  %v406_v3 = vpack.c.bf16 %v65_v1, %v64_v0  ;;  %v67_v4 = vld [vmem:[#allocation5 + $0x18] sm:$0xff]  ;;  %v68_v6 = vld [vmem:[#allocation5 + $0x20] sm:$0xff]  ;;  %s285_s10 = sshll.u32 %s575_s9, 4  ;;  %s286_s10 = int_to_ptr.vmem [resolvable:$true] %s285_s10 }
  0x38   :  { %v410_v5 = vpack.c.bf16 %v67_v4, %v66_v2  ;;  %v69_v7 = vld [vmem:[#allocation5 + $0x28] sm:$0xff]  ;;  %v70_v9 = vld [vmem:[#allocation5 + $0x30] sm:$0xff]  ;;  %v71_v10 = vld [vmem:[#allocation5 + $0x38] sm:$0xff]  ;;  %p547_p11 = scmp.lt.s32.totalorder %s286_s10, %s286_s10 }
  0x39   :  { %407 = vmatprep.subr.bf16.mxu0 %v406_v3  ;;  %v414_v8 = vpack.c.bf16 %v69_v7, %v68_v6  ;;  %v62_v11 = vld [vmem:[#allocation2] sm:$0xff]  ;;  %v164_v12 = vld [vmem:[#allocation7] sm:$0xff]  ;;  %v165_v13 = vld [vmem:[#allocation7 + $0x8] sm:$0xff]  ;;  %v418_v20 = vpack.c.bf16 %v71_v10, %v70_v9 }
  0x3a   :  { %409 = vmatpush3.bf16.msra.mxu0 %v406_v3  ;;  %368 = vmatprep.mubr.f32.mxu0 %v62_v11  ;;  %v166_v14 = vld [vmem:[#allocation7 + $0x10] sm:$0xff]  ;;  %v438_v15 = vpack.c.bf16 %v165_v13, %v164_v12  ;;  %v167_v16 = vld [vmem:[#allocation7 + $0x18] sm:$0xff]  ;;  %v168_v18 = vld [vmem:[#allocation7 + $0x20] sm:$0xff] }
  0x3b   :  { %411 = vmatprep.subr.bf16.mxu0 %v410_v5  ;;  %v442_v17 = vpack.c.bf16 %v167_v16, %v166_v14  ;;  %v169_v19 = vld [vmem:[#allocation7 + $0x28] sm:$0xff]  ;;  %v72_v21 = vld [vmem:[#allocation5 + $0x40] sm:$0xff]  ;;  %v170_v24 = vld [vmem:[#allocation7 + $0x30] sm:$0xff] }
  0x3c   :  { %439 = vmatprep.subr.bf16.mxu1 %v438_v15  ;;  %v73_v22 = vld [vmem:[#allocation5 + $0x48] sm:$0xff]  ;;  %v446_v23 = vpack.c.bf16 %v169_v19, %v168_v18  ;;  %v171_v25 = vld [vmem:[#allocation7 + $0x38] sm:$0xff]  ;;  %v74_v27 = vld [vmem:[#allocation5 + $0x50] sm:$0xff] }
  0x3d   :  { %441 = vmatpush3.bf16.msra.mxu1 %v438_v15  ;;  %v422_v26 = vpack.c.bf16 %v73_v22, %v72_v21  ;;  %v75_v28 = vld [vmem:[#allocation5 + $0x58] sm:$0xff]  ;;  %v450_v29 = vpack.c.bf16 %v171_v25, %v170_v24  ;;  %v172_v30 = vld [vmem:[#allocation7 + $0x40] sm:$0xff]  ;;  %v173_v31 = vld [vmem:[#allocation7 + $0x48] sm:$0xff] }
  0x3e   :  { %413 = vmatpush3.bf16.msra.mxu0 %v410_v5  ;;  %443 = vmatprep.subr.bf16.mxu1 %v442_v17  ;;  %v426_v32 = vpack.c.bf16 %v75_v28, %v74_v27  ;;  %v76_v33 = vld [vmem:[#allocation5 + $0x60] sm:$0xff]  ;;  %v77_v34 = vld [vmem:[#allocation5 + $0x68] sm:$0xff]  ;;  %v454_v35 = vpack.c.bf16 %v173_v31, %v172_v30  ;;  %v174_v36 = vld [vmem:[#allocation7 + $0x50] sm:$0xff] }
  0x3f   :  { %415 = vmatprep.subr.bf16.mxu0 %v414_v8  ;;  %v175_v37 = vld [vmem:[#allocation7 + $0x58] sm:$0xff]  ;;  %v430_v38 = vpack.c.bf16 %v77_v34, %v76_v33  ;;  %v78_v39 = vld [vmem:[#allocation5 + $0x70] sm:$0xff]  ;;  %v176_v42 = vld [vmem:[#allocation7 + $0x60] sm:$0xff] }
  0x40   :  { %v79_v40 = vld [vmem:[#allocation5 + $0x78] sm:$0xff]  ;;  %v458_v41 = vpack.c.bf16 %v175_v37, %v174_v36  ;;  %v177_v43 = vld [vmem:[#allocation7 + $0x68] sm:$0xff]  ;;  %v178_v47 = vld [vmem:[#allocation7 + $0x70] sm:$0xff] }
  0x41   :  { %445 = vmatpush3.bf16.msra.mxu1 %v442_v17  ;;  %v434_v44 = vpack.c.bf16 %v79_v40, %v78_v39  ;;  %v462_v45 = vpack.c.bf16 %v177_v43, %v176_v42  ;;  %v63_v46 = vld [vmem:[#allocation2 + $0x8] sm:$0xff]  ;;  %v298_v50 = vld [vmem:[%s681_s2] ss:$0 sm:$0xff]  ;;  %s542_s2 = scalar_lea.vmem %s286_s10, 256 }
  0x42   :  { %417 = vmatpush3.bf16.msra.mxu0 %v414_v8  ;;  %447 = vmatprep.subr.bf16.mxu1 %v446_v23  ;;  %v179_v48 = vld [vmem:[#allocation7 + $0x78] sm:$0xff]  ;;  %v299_v57 = vld [vmem:[%s683_s4] ss:$0 sm:$0xff]  ;;  %p543_p10 = scmp.ne.s32.totalorder %s286_s10, %s542_s2  ;;  %p548_p12 = scmp.lt.s32.totalorder %s542_s2, %s542_s2 }
  0x43   :  { %419 = vmatprep.subr.bf16.mxu0 %v418_v20  ;;  %v466_v49 = vpack.c.bf16 %v179_v48, %v178_v47 }
  0x44   :  { %p549_p13 = por %p548_p12, %p547_p11 }
  0x45   :  { %449 = vmatpush3.bf16.msra.mxu1 %v446_v23 }
  0x46   :  { %421 = vmatpush3.bf16.msra.mxu0 %v418_v20  ;;  %451 = vmatprep.subr.bf16.mxu1 %v450_v29  ;;  %p550_p0 = pnand %p549_p13, %p543_p10 }
  0x47   :  { %423 = vmatprep.subr.bf16.mxu0 %v422_v26 }
  0x49   :  { %453 = vmatpush3.bf16.msra.mxu1 %v450_v29 }
  0x4a   :  { %425 = vmatpush3.bf16.msra.mxu0 %v422_v26  ;;  %455 = vmatprep.subr.bf16.mxu1 %v454_v35 }
  0x4b   :  { %427 = vmatprep.subr.bf16.mxu0 %v426_v32 }
  0x4d   :  { %457 = vmatpush3.bf16.msra.mxu1 %v454_v35 }
  0x4e   :  { %429 = vmatpush3.bf16.msra.mxu0 %v426_v32  ;;  %459 = vmatprep.subr.bf16.mxu1 %v458_v41 }
  0x4f   :  { %431 = vmatprep.subr.bf16.mxu0 %v430_v38 }
  0x51   :  { %461 = vmatpush3.bf16.msra.mxu1 %v458_v41 }
  0x52   :  { %433 = vmatpush3.bf16.msra.mxu0 %v430_v38  ;;  %463 = vmatprep.subr.bf16.mxu1 %v462_v45 }
  0x53   :  { %435 = vmatprep.subr.bf16.mxu0 %v434_v44 }
  0x55   :  { %465 = vmatpush3.bf16.msra.mxu1 %v462_v45 }
  0x56   :  { %437 = vmatpush3.bf16.msra.mxu0 %v434_v44  ;;  %467 = vmatprep.subr.bf16.mxu1 %v466_v49 }
  0x59   :  { %369 = vmatmul.mubr.f32.vlgmr.msra.gmra.mrb[0].mxu0 %v63_v46  ;;  %469 = vmatpush3.bf16.msra.mxu1 %v466_v49 }
 0x12c   :  { %v370_v51 = vpop.f32.mrb[0].mxu0 }
 0x12d   :  { %v159_v52 = vadd.f32 %v370_v51, %v298_v50  ;;  %v153_v53 = vpop.f32.mrb[1].mxu0 }
 0x12e   :  { %v154_v54 = vadd.f32 %v298_v50, %v153_v53 }
 0x12f   :  { %v163_v56 = vmax.f32 %v159_v52, 0.0 }
 0x130   :  { %v162_v55 = vmax.f32 %v154_v54, 0.0 }
 0x132   :  { %403 = vmatprep.mubr.f32.mxu1 %v162_v55 }
 0x133   :  { %404 = vmatmul.mubr.f32.vlgmr.msra.gmra.mrb[0].mxu1 %v163_v56 }
 0x206   :  { %v405_v58 = vpop.f32.mrb[0].mxu1 }
 0x207   :  { %v267_v59 = vadd.f32 %v405_v58, %v299_v57  ;;  %v246_v60 = vpop.f32.mrb[1].mxu1 }
 0x208   :  { %v266_v61 = vadd.f32 %v299_v57, %v246_v60 }
 0x209   :  { %269 = vst [vmem:[#allocation8 + $0x8] sm:$0xff] %v267_v59 }
 0x20a   :  { %268 = vst [vmem:[#allocation8] sm:$0xff] %v266_v61 }
 0x20b   :  { %553 = shalt.err (!%p550_p0)
}
 0x20c   :  { %s554_s4 = scalar_lea.hbm %s684_s5, 256 }
 0x20d   :  { %p555_p1 = scmp.ne.s32.totalorder %s684_s5, %s554_s4  ;;  %p558_p2 = scmp.lt.u32.totalorder %s554_s4, %s684_s5 }
 0x20f   :  { %p560_p3 = pnand %p558_p2, %p555_p1 }
 0x211   :  { %563 = shalt.err (!%p560_p3)
}
 0x212   :  { %291 = dma.vmem_to_hbm [thread:$0]  %s286_s10, 256, %s684_s5, [#allocation4], %s572_s30, %s572_s30, %s573_s6  }
 0x213   :  { %568 = dma.done.wait [#allocation4], 256  }
 0x214   :  { %569 = vsyncadd [#allocation4], 4294967040 }
 0x215   :  { %295 = vsyncpa [#allocation3], 1 }
 0x216   :  { %296 = vsyncpa [#allocation6], 1 }
 0x217   :  { %297 = vsyncpa [#allocation4], 1 }

</bundles_post_ra>
